<compile_context>
chip_gen: v7x
topology: tpu7x:2x2x1
jax: 0.10.0
libtpu: 0.0.40
codegen_flags: <defaults>
</compile_context>

<pallas_src>
import jax
import jax.numpy as jnp
from jax import lax
from jax.experimental import pallas as pl
from jax.experimental.pallas import tpu as pltpu


def _telu(x, alpha):
    # torch.where(x >= 0, x, alpha * (exp(x) - 1)).
    # NOTE: the false branch is evaluated for ALL x; for large positive x it is
    # +inf but is selected away by the where (never a NaN) -- do not "fix" this.
    return jnp.where(x >= 0, x, alpha * (jnp.exp(x) - 1.0))


def _make_ffnn_kernel(mxu_dtype, act_dtype):
    def kernel(x_ref, w1_ref, b1_ref, w2_ref, b2_ref, w3_ref, b3_ref, o_ref):
        # x_ref: (TB, F) natural layout; cast to the MXU dtype in-kernel so the
        # f32 input is DMA'd as-is (no extra HBM pass in the wrapper).
        x_t = x_ref[...].astype(mxu_dtype)                               # (TB, F)

        # h1^T = W1 @ x^T : contract the feature dims directly (rhs contracts on
        # its last dim, same pattern as q @ k.T) -> lane-dense (32, TB).
        h1 = lax.dot_general(w1_ref[...], x_t, (((1,), (1,)), ((), ())),
                             preferred_element_type=jnp.float32) + b1_ref[...]
        h1 = _telu(h1.astype(act_dtype), 0.15).astype(mxu_dtype)        # (32, TB)

        h2 = jnp.dot(w2_ref[...], h1,
                     preferred_element_type=jnp.float32) + b2_ref[...]  # (64, TB)
        h2 = _telu(h2.astype(act_dtype), 0.1).astype(mxu_dtype)

        h3 = jnp.dot(w3_ref[...], h2,
                     preferred_element_type=jnp.float32) + b3_ref[...]  # (2, TB)
        o_ref[...] = h3.astype(o_ref.dtype)                             # lane-dense store
    return kernel


def ffnn_forward(x, params, *, tb=4096,
                 mxu_dtype=jnp.bfloat16, act_dtype=jnp.bfloat16):
    """x: (B, input_size) -> (B, 2) float32.

    params: (w1, b1, w2, b2, w3, b3); w_i of shape (out, in) (PyTorch Linear
    layout), b_i of shape (out, 1).

    tb        : batch tile (multiple of 128 when B > tb).  4096 fits every
                generation's scoped VMEM budget (v5e 16 MiB included); for v7x
                prefer B large enough that ceil(B/tb) >= 2 so the parallel grid
                axis can be sharded across its two TensorCores.
    mxu_dtype : matmul operand dtype (bf16 is MXU-native on v5e/v6e/v7x).
    act_dtype : dtype TeLU is computed in (use f32 on v5e: no bf16 VPU/EUP).
    """
    w1, b1, w2, b2, w3, b3 = params
    B, F = x.shape
    OUT = w3.shape[0]

    if B <= tb:
        tb_eff, pad_b = B, B                 # single step; block == full batch dim
    else:
        assert tb % 128 == 0, "batch tile must be a multiple of 128"
        tb_eff = tb
        pad_b = pl.cdiv(B, tb) * tb
    grid = (pad_b // tb_eff,)

    x_in = x if pad_b == B else jnp.pad(x, ((0, pad_b - B), (0, 0)))
    w1c, w2c, w3c = (w.astype(mxu_dtype) for w in (w1, w2, w3))
    b1c, b2c, b3c = (b.astype(jnp.float32) for b in (b1, b2, b3))   # added to f32 acc

    const = lambda arr: pl.BlockSpec(arr.shape, lambda i: (0, 0))

    out_t = pl.pallas_call(
        _make_ffnn_kernel(mxu_dtype, act_dtype),
        out_shape=jax.ShapeDtypeStruct((OUT, pad_b), jnp.float32),
        grid_spec=pltpu.PrefetchScalarGridSpec(
            num_scalar_prefetch=0,
            grid=grid,
            in_specs=[
                pl.BlockSpec((tb_eff, F), lambda i: (i, 0)),   # x streamed, natural layout
                const(w1c), const(b1c),                        # ~11 KiB of weights stay resident
                const(w2c), const(b2c),
                const(w3c), const(b3c),
            ],
            out_specs=pl.BlockSpec((OUT, tb_eff), lambda i: (0, i)),
        ),
        compiler_params=pltpu.CompilerParams(
            dimension_semantics=("parallel",),       # v7x: shard batch over 2 TCs
            vmem_limit_bytes=32 * 1024 * 1024,
        ),
    )(x_in, w1c, b1c, w2c, b2c, w3c, b3c)

    # Slice the padded columns off BEFORE transposing (no work on garbage cols).
    return out_t[:, :B].T                                              # (B, 2) f32


def init_params(key, input_size):
    """Deterministic init mimicking nn.Linear (uniform(-1/sqrt(fan_in), +...)).

    Weights stored (out, in) like PyTorch; biases stored (out, 1) so the
    in-kernel broadcast is along lanes."""
    def linear(key, fan_in, fan_out):
        kw, kb = jax.random.split(key)
        bound = 1.0 / jnp.sqrt(jnp.float32(fan_in))
        w = jax.random.uniform(kw, (fan_out, fan_in), jnp.float32, -bound, bound)
        b = jax.random.uniform(kb, (fan_out, 1), jnp.float32, -bound, bound)
        return w, b

    k1, k2, k3 = jax.random.split(key, 3)
    w1, b1 = linear(k1, input_size, 32)
    w2, b2 = linear(k2, 32, 64)
    w3, b3 = linear(k3, 64, 2)
    return (w1, b1, w2, b2, w3, b3)


def ffnn_reference(x, params):
    w1, b1, w2, b2, w3, b3 = params
    h = _telu(x @ w1.T + b1.T, 0.15)
    h = _telu(h @ w2.T + b2.T, 0.1)
    return h @ w3.T + b3.T


if __name__ == "__main__":
    key = jax.random.PRNGKey(0)
    kx, kp, kx2 = jax.random.split(key, 3)

    input_size = 16
    params = init_params(kp, input_size)

    # --- small-shape correctness check (all-f32 path, single grid step) -----
    batch = 8
    x = jax.random.normal(kx, (batch, input_size), jnp.float32)
    out = jax.block_until_ready(
        ffnn_forward(x, params, mxu_dtype=jnp.float32, act_dtype=jnp.float32))
    ref = ffnn_reference(x, params)
    assert out.shape == (batch, 2)
    assert jnp.allclose(out, ref, atol=1e-2, rtol=1e-2), "f32 mismatch vs reference"

    # --- tiled / padded bf16 fast path (default dtypes, default tb=4096) ----
    batch2 = 8320                        # pads to 12288 -> 3 grid steps at tb=4096
    x2 = jax.random.normal(kx2, (batch2, input_size), jnp.float32)
    out2 = jax.block_until_ready(ffnn_forward(x2, params))
    ref2 = ffnn_reference(x2, params)
    assert out2.shape == (batch2, 2)
    assert jnp.allclose(out2, ref2, atol=5e-2, rtol=5e-2), "bf16 mismatch vs reference"

    print("KERNEL_OK")
</pallas_src>

<mosaic_0001>
module attributes {stable_mosaic.version = 11 : i64} {
  func.func @kernel(%arg0: i32, %arg1: memref<8x16xf32, #tpu.memory_space<vmem>>, %arg2: memref<32x16xf32, #tpu.memory_space<vmem>>, %arg3: memref<32x1xf32, #tpu.memory_space<vmem>>, %arg4: memref<64x32xf32, #tpu.memory_space<vmem>>, %arg5: memref<64x1xf32, #tpu.memory_space<vmem>>, %arg6: memref<2x64xf32, #tpu.memory_space<vmem>>, %arg7: memref<2x1xf32, #tpu.memory_space<vmem>>, %arg8: memref<2x8xf32, #tpu.memory_space<vmem>>) attributes {dimension_semantics = [#tpu.dimension_semantics<parallel>], iteration_bounds = array<i64: 1>, scalar_prefetch = 0 : i64, scratch_operands = 0 : i64, tpu.core_type = #tpu.core_type<tc>, window_params = [{transform_indices = @transform_0, window_bounds = array<i64: 8, 16>}, {pipeline_mode = #tpu.pipeline_mode<synchronous>, transform_indices = @transform_1, window_bounds = array<i64: 32, 16>}, {pipeline_mode = #tpu.pipeline_mode<synchronous>, transform_indices = @transform_2, window_bounds = array<i64: 32, 1>}, {pipeline_mode = #tpu.pipeline_mode<synchronous>, transform_indices = @transform_3, window_bounds = array<i64: 64, 32>}, {pipeline_mode = #tpu.pipeline_mode<synchronous>, transform_indices = @transform_4, window_bounds = array<i64: 64, 1>}, {pipeline_mode = #tpu.pipeline_mode<synchronous>, transform_indices = @transform_5, window_bounds = array<i64: 2, 64>}, {pipeline_mode = #tpu.pipeline_mode<synchronous>, transform_indices = @transform_6, window_bounds = array<i64: 2, 1>}, {transform_indices = @transform_7, window_bounds = array<i64: 2, 8>}]} {
    %c0 = arith.constant 0 : index
    %c0_0 = arith.constant 0 : index
    %0 = vector.load %arg1[%c0, %c0_0] : memref<8x16xf32, #tpu.memory_space<vmem>>, vector<8x16xf32>
    %c0_1 = arith.constant 0 : index
    %c0_2 = arith.constant 0 : index
    %1 = vector.load %arg2[%c0_1, %c0_2] : memref<32x16xf32, #tpu.memory_space<vmem>>, vector<32x16xf32>
    %cst = arith.constant dense<0.000000e+00> : vector<32x8xf32>
    %2 = tpu.matmul %1, %0, %cst {dimension_numbers = #tpu.dot_dimension_numbers<[1], [1], [0], [0], [0, 0, 1, 0], [], []>} : vector<32x16xf32>, vector<8x16xf32>, vector<32x8xf32> -> vector<32x8xf32>
    %c0_3 = arith.constant 0 : index
    %c0_4 = arith.constant 0 : index
    %3 = vector.load %arg3[%c0_3, %c0_4] : memref<32x1xf32, #tpu.memory_space<vmem>>, vector<32x1xf32>
    %4 = vector.broadcast %3 : vector<32x1xf32> to vector<32x8xf32>
    %5 = arith.addf %2, %4 : vector<32x8xf32>
    %cst_5 = arith.constant 0.000000e+00 : f32
    %6 = vector.broadcast %cst_5 : f32 to vector<32x8xf32>
    %7 = arith.cmpf oge, %5, %6 : vector<32x8xf32>
    %8 = math.exp %5 : vector<32x8xf32>
    %cst_6 = arith.constant 1.000000e+00 : f32
    %9 = vector.broadcast %cst_6 : f32 to vector<32x8xf32>
    %10 = arith.subf %8, %9 : vector<32x8xf32>
    %cst_7 = arith.constant 1.500000e-01 : f32
    %11 = vector.broadcast %cst_7 : f32 to vector<32x8xf32>
    %12 = arith.mulf %11, %10 : vector<32x8xf32>
    %13 = arith.select %7, %5, %12 : vector<32x8xi1>, vector<32x8xf32>
    %c0_8 = arith.constant 0 : index
    %c0_9 = arith.constant 0 : index
    %14 = vector.load %arg4[%c0_8, %c0_9] : memref<64x32xf32, #tpu.memory_space<vmem>>, vector<64x32xf32>
    %cst_10 = arith.constant dense<0.000000e+00> : vector<64x8xf32>
    %15 = tpu.matmul %14, %13, %cst_10 {dimension_numbers = #tpu.dot_dimension_numbers<[1], [0], [0], [1], [0, 0, 1, 1], [], []>} : vector<64x32xf32>, vector<32x8xf32>, vector<64x8xf32> -> vector<64x8xf32>
    %c0_11 = arith.constant 0 : index
    %c0_12 = arith.constant 0 : index
    %16 = vector.load %arg5[%c0_11, %c0_12] : memref<64x1xf32, #tpu.memory_space<vmem>>, vector<64x1xf32>
    %17 = vector.broadcast %16 : vector<64x1xf32> to vector<64x8xf32>
    %18 = arith.addf %15, %17 : vector<64x8xf32>
    %cst_13 = arith.constant 0.000000e+00 : f32
    %19 = vector.broadcast %cst_13 : f32 to vector<64x8xf32>
    %20 = arith.cmpf oge, %18, %19 : vector<64x8xf32>
    %21 = math.exp %18 : vector<64x8xf32>
    %cst_14 = arith.constant 1.000000e+00 : f32
    %22 = vector.broadcast %cst_14 : f32 to vector<64x8xf32>
    %23 = arith.subf %21, %22 : vector<64x8xf32>
    %cst_15 = arith.constant 1.000000e-01 : f32
    %24 = vector.broadcast %cst_15 : f32 to vector<64x8xf32>
    %25 = arith.mulf %24, %23 : vector<64x8xf32>
    %26 = arith.select %20, %18, %25 : vector<64x8xi1>, vector<64x8xf32>
    %c0_16 = arith.constant 0 : index
    %c0_17 = arith.constant 0 : index
    %27 = vector.load %arg6[%c0_16, %c0_17] : memref<2x64xf32, #tpu.memory_space<vmem>>, vector<2x64xf32>
    %cst_18 = arith.constant dense<0.000000e+00> : vector<2x8xf32>
    %28 = tpu.matmul %27, %26, %cst_18 {dimension_numbers = #tpu.dot_dimension_numbers<[1], [0], [0], [1], [0, 0, 1, 1], [], []>} : vector<2x64xf32>, vector<64x8xf32>, vector<2x8xf32> -> vector<2x8xf32>
    %c0_19 = arith.constant 0 : index
    %c0_20 = arith.constant 0 : index
    %29 = vector.load %arg7[%c0_19, %c0_20] : memref<2x1xf32, #tpu.memory_space<vmem>>, vector<2x1xf32>
    %30 = vector.broadcast %29 : vector<2x1xf32> to vector<2x8xf32>
    %31 = arith.addf %28, %30 : vector<2x8xf32>
    %c0_21 = arith.constant 0 : index
    %c0_22 = arith.constant 0 : index
    %32 = vector.load %arg8[%c0_21, %c0_22] : memref<2x8xf32, #tpu.memory_space<vmem>>, vector<2x8xf32>
    tpu.vector_store %arg8[%c0_21, %c0_22], %31 {strides = array<i32>} : memref<2x8xf32, #tpu.memory_space<vmem>>, vector<2x8xf32>,
    return
  }
  func.func @transform_0(%arg0: i32) -> (i32, i32) {
    %c0_i32 = arith.constant 0 : i32
    %c0_i32_0 = arith.constant 0 : i32
    return %arg0, %c0_i32 : i32, i32
  }
  func.func @transform_1(%arg0: i32) -> (i32, i32) {
    %c0_i32 = arith.constant 0 : i32
    %c0_i32_0 = arith.constant 0 : i32
    %c0_i32_1 = arith.constant 0 : i32
    return %c0_i32, %c0_i32_0 : i32, i32
  }
  func.func @transform_2(%arg0: i32) -> (i32, i32) {
    %c0_i32 = arith.constant 0 : i32
    %c0_i32_0 = arith.constant 0 : i32
    %c0_i32_1 = arith.constant 0 : i32
    return %c0_i32, %c0_i32_0 : i32, i32
  }
  func.func @transform_3(%arg0: i32) -> (i32, i32) {
    %c0_i32 = arith.constant 0 : i32
    %c0_i32_0 = arith.constant 0 : i32
    %c0_i32_1 = arith.constant 0 : i32
    return %c0_i32, %c0_i32_0 : i32, i32
  }
  func.func @transform_4(%arg0: i32) -> (i32, i32) {
    %c0_i32 = arith.constant 0 : i32
    %c0_i32_0 = arith.constant 0 : i32
    %c0_i32_1 = arith.constant 0 : i32
    return %c0_i32, %c0_i32_0 : i32, i32
  }
  func.func @transform_5(%arg0: i32) -> (i32, i32) {
    %c0_i32 = arith.constant 0 : i32
    %c0_i32_0 = arith.constant 0 : i32
    %c0_i32_1 = arith.constant 0 : i32
    return %c0_i32, %c0_i32_0 : i32, i32
  }
  func.func @transform_6(%arg0: i32) -> (i32, i32) {
    %c0_i32 = arith.constant 0 : i32
    %c0_i32_0 = arith.constant 0 : i32
    %c0_i32_1 = arith.constant 0 : i32
    return %c0_i32, %c0_i32_0 : i32, i32
  }
  func.func @transform_7(%arg0: i32) -> (i32, i32) {
    %c0_i32 = arith.constant 0 : i32
    %c0_i32_0 = arith.constant 0 : i32
    return %c0_i32, %arg0 : i32, i32
  }
}

</mosaic_0001>

<bundles_post_ra>
// kernel: tpu_custom_call.1
= control target key start
LH: loop header
LB: loop body
LE: loop exit
PB: predicated region body
PF: predicated region fallthrough
CT: control target
= control target key end

     0   :  { %vm56_vm0 = vcmask 130048   ;;  %v686_v4 = vmov 0   ;;  %s842_s0 = inlined_call_operand.vmem [shape: f32[8,16], index: 0, kind: input, shape index: {}]   ;;  %s843_s1 = inlined_call_operand.vmem [shape: f32[32,16], index: 1, kind: input, shape index: {}]   ;;  %s844_s2 = inlined_call_operand.vmem [shape: f32[32,1], index: 2, kind: input, shape index: {}]   ;;  %s845_s3 = inlined_call_operand.vmem [shape: f32[64,32], index: 3, kind: input, shape index: {}]   ;;  %s846_s4 = inlined_call_operand.vmem [shape: f32[64,1], index: 4, kind: input, shape index: {}]   ;;  %s847_s5 = inlined_call_operand.vmem [shape: f32[2,64], index: 5, kind: input, shape index: {}]   ;;  %s848_s6 = inlined_call_operand.vmem [shape: f32[2,1], index: 6, kind: input, shape index: {}]   ;;  %s849_s7 = inlined_call_operand.hbm [shape: f32[2,8], index: 7, kind: output, shape index: {}]  }
   0x1   :  { %v27_v0 = vld [vmem:[%s842_s0] sm:$0xff]  ;;  %v29_v3 = vld [vmem:[%s843_s1 + $0x8] sm:$0xff]  ;;  %636 = vset.pattern.permute.xlu0 %v686_v4  ;;  %v34_v5 = vld [vmem:[%s844_s2 + $0x10] sm:$0xff]  ;;  %637 = vset.pattern.permute.xlu1 %v686_v4 }
   0x2   :  { %v28_v1 = vld [vmem:[%s843_s1] sm:$0xff]  ;;  %564 = vmatprep.subr.msk.mxu0 %vm56_vm0, %v27_v0  ;;  %v30_v6 = vld [vmem:[%s843_s1 + $0x10] sm:$0xff]  ;;  %v33_v7 = vld [vmem:[%s844_s2 + $0x8] sm:$0xff]  ;;  %48 = vperm.xlu1 %637, %v34_v5  }
   0x3   :  { %566 = vmatprep.mubr.msk.f32.mxu0 %vm56_vm0, %v28_v1  ;;  %v32_v2 = vld [vmem:[%s844_s2] sm:$0xff]  ;;  %565 = vmatpush3.xpose.msk.msra.mxu0 %vm56_vm0, %v27_v0  ;;  %v35_v8 = vld [vmem:[%s844_s2 + $0x18] sm:$0xff] }
   0x4   :  { %38 = vperm.xlu0 %636, %v32_v2   ;;  %v31_v9 = vld [vmem:[%s843_s1 + $0x18] sm:$0xff] }
   0x6   :  { %567 = vmatmul.mubr.msk.f32.vlgmr.msra.gmra.mrb[0].mxu0 %vm56_vm0, %v29_v3 }
   0x7   :  { %569 = vmatprep.mubr.msk.f32.mxu0 %vm56_vm0, %v30_v6 }
   0x8   :  { %12 = vsyncpa [#allocation3], 0  ;;  %43 = vperm.xlu0 %636, %v33_v7   ;;  %v189_v10 = vld [vmem:[%s846_s4] sm:$0xff]  ;;  %53 = vperm.xlu1 %637, %v35_v8   ;;  %v190_v11 = vld [vmem:[%s846_s4 + $0x8] sm:$0xff]  ;;  %vm237_vm1 = vcmask 261120   ;;  %v687_v61 = vmov 0.0|0.0  }
   0x9   :  { %v191_v12 = vld [vmem:[%s846_s4 + $0x10] sm:$0xff]  ;;  %v192_v13 = vld [vmem:[%s846_s4 + $0x18] sm:$0xff]  ;;  %v193_v14 = vld [vmem:[%s846_s4 + $0x20] sm:$0xff]  ;;  %619 = vmatprep.subr.bf16.mxu0 %v687_v61  ;;  %vm688_vm6 = vmmov 0   ;;  %v689_v62 = vmov 0.0   ;;  %vm422_vm15 = vcmask 523264  }
   0xa   :  { %570 = vmatmul.mubr.msk.f32.gmra.mrb[2].mxu0 %vm56_vm0, %v31_v9  ;;  %v194_v15 = vld [vmem:[%s846_s4 + $0x28] sm:$0xff]  ;;  %v195_v16 = vld [vmem:[%s846_s4 + $0x30] sm:$0xff]  ;;  %v196_v17 = vld [vmem:[%s846_s4 + $0x38] sm:$0xff]  ;;  %s690_s23 = smov [#allocation2]   ;;  %vm496_vm0 = vcmask 58368  }
   0xb   :  { %v416_v18 = vld [vmem:[%s848_s6] sm:$0x3]  ;;  %v182_v54 = vld [vmem:[%s845_s3 + $0x8] sm:$0xff]  ;;  %v183_v55 = vld [vmem:[%s845_s3 + $0x10] sm:$0xff]  ;;  %608 = vmatprep.mubr.msk.f32.mxu0 %vm688_vm6, %v689_v62  ;;  %s504_s24 = sshll.u32 %s690_s23, 4  ;;  %s505_s24 = int_to_ptr.vmem [resolvable:$true] %s504_s24 }
   0xc   :  { %199 = vperm.xlu0 %636, %v189_v10   ;;  %204 = vperm.xlu1 %637, %v190_v11   ;;  %v181_v19 = vld [vmem:[%s845_s3] sm:$0xff]  ;;  %v184_v56 = vld [vmem:[%s845_s3 + $0x18] sm:$0xff]  ;;  %v186_v58 = vld [vmem:[%s845_s3 + $0x28] sm:$0xff]  ;;  %s662_s25 = scalar_lea.vmem %s505_s24, 32  ;;  %p667_p1 = scmp.lt.s32.totalorder %s505_s24, %s505_s24 }
   0xd   :  { %580 = vmatprep.mubr.msk.f32.mxu1 %vm237_vm1, %v181_v19  ;;  %v185_v57 = vld [vmem:[%s845_s3 + $0x20] sm:$0xff]  ;;  %v187_v59 = vld [vmem:[%s845_s3 + $0x30] sm:$0xff]  ;;  %v188_v60 = vld [vmem:[%s845_s3 + $0x38] sm:$0xff]  ;;  %p663_p0 = scmp.ne.s32.totalorder %s505_s24, %s662_s25  ;;  %p668_p2 = scmp.lt.s32.totalorder %s662_s25, %s662_s25 }
   0xf   :  { %p669_p3 = por %p668_p2, %p667_p1 }
  0x10   :  { %209 = vperm.xlu0 %636, %v191_v12   ;;  %214 = vperm.xlu1 %637, %v192_v13  }
  0x11   :  { %p670_p4 = pnand %p669_p3, %p663_p0 }
  0x14   :  { %219 = vperm.xlu0 %636, %v193_v14   ;;  %224 = vperm.xlu1 %637, %v194_v15  }
  0x18   :  { %229 = vperm.xlu0 %636, %v195_v16   ;;  %234 = vperm.xlu1 %637, %v196_v17  }
  0x1c   :  { %419 = vperm.xlu0 %636, %v416_v18  }
  0x81   :  { %v49_v21 = vpop.permute.xlu1 %48 }
  0x83   :  { %v39_v20 = vpop.permute.xlu0 %38 }
  0x87   :  { %v44_v22 = vpop.permute.xlu0 %43  ;;  %v54_v28 = vpop.permute.xlu1 %53 }
  0x8b   :  { %v205_v63 = vpop.permute.xlu1 %204  ;;  %v200_v0 = vpop.permute.xlu0 %199 }
  0x8f   :  { %v215_v1 = vpop.permute.xlu1 %214  ;;  %v210_v3 = vpop.permute.xlu0 %209 }
  0x93   :  { %v225_v12 = vpop.permute.xlu1 %224  ;;  %v220_v14 = vpop.permute.xlu0 %219 }
  0xd9   :  { %v568_v23 = vpop.f32.mrb[0].mxu0 }
  0xda   :  { %v144_v24 = vadd.f32 %v568_v23, %v44_v22  ;;  %v138_v25 = vpop.f32.mrb[1].mxu0  ;;  %v235_v22 = vpop.permute.xlu1 %234 }
  0xdb   :  { %v139_v26 = vadd.f32 %v138_v25, %v39_v20  ;;  %v230_v25 = vpop.permute.xlu0 %229 }
  0xdc   :  { %v163_v27 = vmul.f32 1.442695, %v144_v24  ;;  %vm158_vm2 = vcmp.ge.f32.partialorder %v144_v24, 0.0 }
  0xdd   :  { %v161_v29 = vmul.f32 1.442695, %v139_v26  ;;  %v571_v30 = vpop.f32.mrb[2].mxu0  ;;  %vm157_vm3 = vcmp.ge.f32.partialorder %v139_v26, 0.0 }
  0xde   :  { %638 = vpow2.f32 %v163_v27  ;;  %v154_v31 = vadd.f32 %v571_v30, %v54_v28  ;;  %v148_v32 = vpop.f32.mrb[3].mxu0 }
  0xdf   :  { %640 = vpow2.f32 %v161_v29  ;;  %v149_v33 = vadd.f32 %v148_v32, %v49_v21 }
  0xe0   :  { %v167_v34 = vmul.f32 1.442695, %v154_v31  ;;  %vm160_vm4 = vcmp.ge.f32.partialorder %v154_v31, 0.0 }
  0xe1   :  { %v165_v35 = vmul.f32 1.442695, %v149_v33  ;;  %vm159_vm5 = vcmp.ge.f32.partialorder %v149_v33, 0.0 }
  0xe2   :  { %642 = vpow2.f32 %v167_v34 }
  0xe3   :  { %644 = vpow2.f32 %v165_v35 }
  0xe8   :  { %v639_v36 = vpop.eup %638 }
  0xe9   :  { %v641_v37 = vpop.eup %640  ;;  %v518_v38 = vadd.f32 -1.0, %v639_v36 }
  0xea   :  { %v517_v39 = vadd.f32 -1.0, %v641_v37 }
  0xeb   :  { %v174_v40 = vmul.f32 0.15, %v518_v38 }
  0xec   :  { %v643_v41 = vpop.eup %642  ;;  %v173_v42 = vmul.f32 0.15, %v517_v39 }
  0xed   :  { %v645_v43 = vpop.eup %644  ;;  %v520_v44 = vadd.f32 -1.0, %v643_v41  ;;  %v178_v45 = vsel %vm158_vm2, %v144_v24, %v174_v40 }
  0xee   :  { %v519_v46 = vadd.f32 -1.0, %v645_v43  ;;  %v177_v47 = vsel %vm157_vm3, %v139_v26, %v173_v42 }
  0xef   :  { %v176_v48 = vmul.f32 0.15, %v520_v44  ;;  %v611_v49 = vpack.c.bf16 %v178_v45, %v177_v47 }
  0xf0   :  { %v175_v50 = vmul.f32 0.15, %v519_v46 }
  0xf1   :  { %612 = vmatprep.subr.bf16.mxu1 %v611_v49  ;;  %v180_v51 = vsel %vm160_vm4, %v154_v31, %v176_v48 }
  0xf2   :  { %614 = vmatpush3.bf16.msra.mxu1 %v611_v49  ;;  %v179_v52 = vsel %vm159_vm5, %v149_v33, %v175_v50 }
  0xf3   :  { %v615_v53 = vpack.c.bf16 %v180_v51, %v179_v52 }
  0xf5   :  { %616 = vmatprep.subr.bf16.mxu1 %v615_v53 }
  0xf6   :  { %618 = vmatpush3.bf16.msra.mxu1 %v615_v53 }
  0xf9   :  { %581 = vmatmul.mubr.msk.f32.vlgmr.msra.gmra.mrb[0].mxu1 %vm237_vm1, %v182_v54 }
  0xfa   :  { %583 = vmatprep.mubr.msk.f32.mxu1 %vm237_vm1, %v183_v55 }
  0xfd   :  { %584 = vmatmul.mubr.msk.f32.gmra.mrb[2].mxu1 %vm237_vm1, %v184_v56 }
  0xfe   :  { %586 = vmatprep.mubr.msk.f32.mxu1 %vm237_vm1, %v185_v57 }
 0x101   :  { %587 = vmatmul.mubr.msk.f32.gmra.mrb[4].mxu1 %vm237_vm1, %v186_v58 }
 0x102   :  { %589 = vmatprep.mubr.msk.f32.mxu1 %vm237_vm1, %v187_v59 }
 0x105   :  { %590 = vmatmul.mubr.msk.f32.gmra.mrb[6].mxu1 %vm237_vm1, %v188_v60 }
 0x1cc   :  { %v582_v2 = vpop.f32.mrb[0].mxu1 }
 0x1cd   :  { %v334_v4 = vadd.f32 %v582_v2, %v205_v63  ;;  %v328_v5 = vpop.f32.mrb[1].mxu1 }
 0x1ce   :  { %v329_v6 = vadd.f32 %v328_v5, %v200_v0  ;;  %v420_v5 = vpop.permute.xlu0 %419 }
 0x1cf   :  { %v377_v7 = vmul.f32 1.442695, %v334_v4  ;;  %vm368_vm7 = vcmp.ge.f32.partialorder %v334_v4, 0.0 }
 0x1d0   :  { %v375_v8 = vmul.f32 1.442695, %v329_v6  ;;  %v585_v9 = vpop.f32.mrb[2].mxu1  ;;  %vm367_vm8 = vcmp.ge.f32.partialorder %v329_v6, 0.0 }
 0x1d1   :  { %646 = vpow2.f32 %v377_v7  ;;  %v344_v10 = vadd.f32 %v585_v9, %v215_v1  ;;  %v338_v11 = vpop.f32.mrb[3].mxu1 }
 0x1d2   :  { %648 = vpow2.f32 %v375_v8  ;;  %v339_v13 = vadd.f32 %v338_v11, %v210_v3 }
 0x1d3   :  { %v381_v15 = vmul.f32 1.442695, %v344_v10  ;;  %vm370_vm9 = vcmp.ge.f32.partialorder %v344_v10, 0.0 }
 0x1d4   :  { %v379_v16 = vmul.f32 1.442695, %v339_v13  ;;  %v588_v17 = vpop.f32.mrb[4].mxu1  ;;  %vm369_vm10 = vcmp.ge.f32.partialorder %v339_v13, 0.0 }
 0x1d5   :  { %650 = vpow2.f32 %v381_v15  ;;  %v354_v18 = vadd.f32 %v588_v17, %v225_v12  ;;  %v348_v19 = vpop.f32.mrb[5].mxu1 }
 0x1d6   :  { %652 = vpow2.f32 %v379_v16  ;;  %v349_v20 = vadd.f32 %v348_v19, %v220_v14 }
 0x1d7   :  { %v385_v21 = vmul.f32 1.442695, %v354_v18  ;;  %vm372_vm11 = vcmp.ge.f32.partialorder %v354_v18, 0.0 }
 0x1d8   :  { %v383_v23 = vmul.f32 1.442695, %v349_v20  ;;  %v591_v24 = vpop.f32.mrb[6].mxu1  ;;  %vm371_vm12 = vcmp.ge.f32.partialorder %v349_v20, 0.0 }
 0x1d9   :  { %654 = vpow2.f32 %v385_v21  ;;  %v364_v26 = vadd.f32 %v591_v24, %v235_v22  ;;  %v358_v27 = vpop.f32.mrb[7].mxu1 }
 0x1da   :  { %656 = vpow2.f32 %v383_v23  ;;  %v359_v28 = vadd.f32 %v358_v27, %v230_v25 }
 0x1db   :  { %v647_v29 = vpop.eup %646  ;;  %v389_v30 = vmul.f32 1.442695, %v364_v26  ;;  %vm374_vm13 = vcmp.ge.f32.partialorder %v364_v26, 0.0 }
 0x1dc   :  { %v649_v31 = vpop.eup %648  ;;  %v530_v32 = vadd.f32 -1.0, %v647_v29  ;;  %v387_v33 = vmul.f32 1.442695, %v359_v28  ;;  %vm373_vm14 = vcmp.ge.f32.partialorder %v359_v28, 0.0 }
 0x1dd   :  { %v529_v34 = vadd.f32 -1.0, %v649_v31  ;;  %658 = vpow2.f32 %v389_v30 }
 0x1de   :  { %v400_v35 = vmul.f32 0.1, %v530_v32  ;;  %660 = vpow2.f32 %v387_v33 }
 0x1df   :  { %v651_v36 = vpop.eup %650  ;;  %v399_v37 = vmul.f32 0.1, %v529_v34 }
 0x1e0   :  { %v653_v38 = vpop.eup %652  ;;  %v408_v39 = vsel %vm368_vm7, %v334_v4, %v400_v35  ;;  %v532_v40 = vadd.f32 -1.0, %v651_v36  ;;  %v415_v4 = vld [vmem:[%s847_s5] sm:$0x3] }
 0x1e1   :  { %v407_v41 = vsel %vm367_vm8, %v329_v6, %v399_v37  ;;  %v531_v42 = vadd.f32 -1.0, %v653_v38 }
 0x1e2   :  { %v620_v43 = vpack.c.bf16 %v408_v39, %v407_v41  ;;  %v402_v44 = vmul.f32 0.1, %v532_v40 }
 0x1e3   :  { %v655_v45 = vpop.eup %654  ;;  %v401_v46 = vmul.f32 0.1, %v531_v42 }
 0x1e4   :  { %v657_v47 = vpop.eup %656  ;;  %v410_v48 = vsel %vm370_vm9, %v344_v10, %v402_v44  ;;  %v534_v49 = vadd.f32 -1.0, %v655_v45  ;;  %621 = vmatpush3.bf16.msra.mxu0 %v620_v43 }
 0x1e5   :  { %v409_v50 = vsel %vm369_vm10, %v339_v13, %v401_v46  ;;  %v533_v51 = vadd.f32 -1.0, %v657_v47  ;;  %622 = vmatprep.subr.bf16.mxu0 %v687_v61 }
 0x1e6   :  { %v623_v52 = vpack.c.bf16 %v410_v48, %v409_v50  ;;  %v404_v53 = vmul.f32 0.1, %v534_v49 }
 0x1e7   :  { %v659_v54 = vpop.eup %658  ;;  %v403_v55 = vmul.f32 0.1, %v533_v51 }
 0x1e8   :  { %v661_v56 = vpop.eup %660  ;;  %v412_v57 = vsel %vm372_vm11, %v354_v18, %v404_v53  ;;  %v536_v58 = vadd.f32 -1.0, %v659_v54  ;;  %624 = vmatpush3.bf16.msra.mxu0 %v623_v52 }
 0x1e9   :  { %v411_v59 = vsel %vm371_vm12, %v349_v20, %v403_v55  ;;  %v535_v60 = vadd.f32 -1.0, %v661_v56  ;;  %625 = vmatprep.subr.bf16.mxu0 %v687_v61 }
 0x1ea   :  { %v626_v62 = vpack.c.bf16 %v412_v57, %v411_v59  ;;  %v406_v63 = vmul.f32 0.1, %v536_v58 }
 0x1eb   :  { %v405_v0 = vmul.f32 0.1, %v535_v60 }
 0x1ec   :  { %v414_v1 = vsel %vm374_vm13, %v364_v26, %v406_v63  ;;  %627 = vmatpush3.bf16.msra.mxu0 %v626_v62 }
 0x1ed   :  { %v413_v2 = vsel %vm373_vm14, %v359_v28, %v405_v0  ;;  %628 = vmatprep.subr.bf16.mxu0 %v687_v61 }
 0x1ee   :  { %v629_v3 = vpack.c.bf16 %v414_v1, %v413_v2 }
 0x1f0   :  { %630 = vmatpush3.bf16.msra.mxu0 %v629_v3 }
 0x1f3   :  { %609 = vmatmul.mubr.msk.f32.vlgmr.msra.gmra.mrb[4].mxu0 %vm422_vm15, %v415_v4 }
 0x2c6   :  { %v492_v6 = vpop.f32.mrb[4].mxu0 }
 0x2c7   :  { %v493_v7 = vadd.f32 %v492_v6, %v420_v5  ;;  %v610_v8 = vpop.f32.mrb[5].mxu0 }
 0x2c9   :  { %497 = vst.msk [vmem:[#allocation2] sm:$0x3] %vm496_vm0, %v493_v7 }
 0x2ca   :  { %673 = shalt.err (!%p670_p4)
}
 0x2cb   :  { %s674_s27 = scalar_lea.hbm %s849_s7, 32 }
 0x2cc   :  { %p675_p5 = scmp.ne.s32.totalorder %s849_s7, %s674_s27  ;;  %p678_p6 = scmp.lt.u32.totalorder %s674_s27, %s849_s7 }
 0x2ce   :  { %p680_p7 = pnand %p678_p6, %p675_p5 }
 0x2d0   :  { %683 = shalt.err (!%p680_p7)
}
 0x2d1   :  { %507 = dma.vmem_to_hbm [thread:$0]  %s505_s24, 32, %s849_s7, [#allocation3]  }
 0x2d2   :  { %684 = dma.done.wait [#allocation3], 32  }
 0x2d3   :  { %685 = vsyncadd [#allocation3], 4294967264 }
 0x2d4   :  { %511 = vsyncpa [#allocation3], 1 }

</bundles_post_ra>
